<compile_context>
chip_gen: v7x
topology: tpu7x:2x2x1
jax: 0.10.0
libtpu: 0.0.40
codegen_flags: <defaults>
</compile_context>

<pallas_src>
import jax
import jax.numpy as jnp
from jax.experimental import pallas as pl
from jax.experimental.pallas import tpu as pltpu  # noqa: F401  (kept for API parity)

EPS = 1e-5


# --------------------------- Pallas kernels ---------------------------------

def _conv1_bn_relu_shortcut_kernel(p_ref, w_ref, b_ref, g_ref, be_ref,
                                   y_ref, sc_ref):
    """First stage: fused [conv1 | 1x1 shortcut] GEMM + BN1 + ReLU.

    p_ref : (9*Cin, P)  f32   im2col patches of x, positions on lanes
    w_ref : (2*C, 9*Cin) f32  rows [:C] = conv1 taps, rows [C:] = shortcut
    b_ref : (2*C, 1) f32      [b1 ; b1x1]
    g_ref, be_ref : (C, 1) f32 BN1 gamma / beta
    y_ref : (C, P)  f32  out  ReLU(BN(conv1(x)))
    sc_ref: (C, P)  f32  out  conv1x1(x) + b1x1
    """
    C = y_ref.shape[0]
    P = y_ref.shape[1]

    # one MXU GEMM, K = 9*Cin, f32 accumulation
    z = jnp.dot(w_ref[...], p_ref[...],
                preferred_element_type=jnp.float32) + b_ref[...]     # (2C, P)

    h = z[:C, :]                 # conv1 pre-BN activations
    sc_ref[...] = z[C:, :]       # shortcut branch (lane-dense store)

    # one-pass BN stats (batch stats over all P positions, biased variance)
    inv_p = 1.0 / P
    mean = jnp.sum(h, axis=1, keepdims=True) * inv_p
    ex2 = jnp.sum(h * h, axis=1, keepdims=True) * inv_p
    var = ex2 - mean * mean
    scale = g_ref[...] * jax.lax.rsqrt(var + EPS)    # folded gamma/rsqrt (EUP)
    shift = be_ref[...] - mean * scale

    y_ref[...] = jnp.maximum(h * scale + shift, 0.0).astype(y_ref.dtype)


def _conv2_bn_relu_add_kernel(p_ref, w_ref, b_ref, g_ref, be_ref, sc_ref, o_ref):
    """Second stage: conv2 GEMM + BN2 + ReLU + residual add.

    p_ref : (9*C, P) f32    im2col patches of y1
    w_ref : (C, 9*C) f32    conv2 weight (transposed, flattened taps)
    b_ref, g_ref, be_ref : (C, 1) f32
    sc_ref: (C, P) f32      shortcut from stage 1
    o_ref : (C, P) f32 out  final residual-block output (lane-dense store)
    """
    P = o_ref.shape[1]

    z = jnp.dot(w_ref[...], p_ref[...],
                preferred_element_type=jnp.float32) + b_ref[...]     # (C, P)

    inv_p = 1.0 / P
    mean = jnp.sum(z, axis=1, keepdims=True) * inv_p
    ex2 = jnp.sum(z * z, axis=1, keepdims=True) * inv_p
    var = ex2 - mean * mean
    scale = g_ref[...] * jax.lax.rsqrt(var + EPS)
    shift = be_ref[...] - mean * scale

    y2 = jnp.maximum(z * scale + shift, 0.0)
    o_ref[...] = y2 + sc_ref[...]


# ------------------------------- wrapper -------------------------------------

def _im2col_3x3_t(x_nhwc):
    """(N,H,W,C) -> (9*C, N*H*W): flattened 3x3 SAME patches, positions on lanes."""
    N, H, W, C = x_nhwc.shape
    xp = jnp.pad(x_nhwc, ((0, 0), (1, 1), (1, 1), (0, 0)))
    taps = [xp[:, ky:ky + H, kx:kx + W, :] for ky in range(3) for kx in range(3)]
    patches = jnp.concatenate(taps, axis=-1)          # (N, H, W, 9*C)
    return patches.reshape(N * H * W, 9 * C).T        # (9*C, P)


@jax.jit
def residual_block_pallas(x_nchw, params):
    N, Cin, H, W = x_nchw.shape
    C = params["w1x1"].shape[-1]
    P = N * H * W

    x = jnp.transpose(x_nchw, (0, 2, 3, 1)).astype(jnp.float32)      # NCHW -> NHWC

    # ---- stage 1 operands: fused [conv1 | 1x1 shortcut] GEMM ----------------
    p1_t = _im2col_3x3_t(x)                                          # (9*Cin, P) f32
    w1_flat = params["w1"].reshape(9 * Cin, C)                       # tap-major rows
    w_sc = jnp.zeros((9 * Cin, C), jnp.float32).at[4 * Cin:5 * Cin, :].set(
        params["w1x1"])                                              # centre tap only
    w1cat_t = jnp.concatenate([w1_flat, w_sc], axis=1).T             # (2C, 9*Cin) f32
    b1cat = jnp.concatenate([params["b1"], params["b1x1"]]).reshape(2 * C, 1)
    g1 = params["g1"].reshape(C, 1)
    be1 = params["be1"].reshape(C, 1)

    y1_t, sc_t = pl.pallas_call(
        _conv1_bn_relu_shortcut_kernel,
        out_shape=(jax.ShapeDtypeStruct((C, P), jnp.float32),
                   jax.ShapeDtypeStruct((C, P), jnp.float32)),
        # no grid: all operands fit comfortably in VMEM at this size
    )(p1_t, w1cat_t, b1cat, g1, be1)

    # ---- stage 2 operands: conv2 GEMM on im2col(y1) -------------------------
    y1_nhwc = y1_t.T.reshape(N, H, W, C)                             # small transpose in XLA
    p2_t = _im2col_3x3_t(y1_nhwc)                                    # (9*C, P) f32
    w2_t = params["w2"].reshape(9 * C, C).T                          # (C, 9*C) f32
    b2 = params["b2"].reshape(C, 1)
    g2 = params["g2"].reshape(C, 1)
    be2 = params["be2"].reshape(C, 1)

    out_t = pl.pallas_call(
        _conv2_bn_relu_add_kernel,
        out_shape=jax.ShapeDtypeStruct((C, P), jnp.float32),
    )(p2_t, w2_t, b2, g2, be2, sc_t)

    # (C, N*H*W) -> (N, C, H, W)
    return out_t.reshape(C, N, H, W).transpose(1, 0, 2, 3)


# ---------------- pure-JAX f32 reference (for correctness check) -------------

def residual_block_ref(x_nchw, params):
    x = jnp.transpose(x_nchw, (0, 2, 3, 1)).astype(jnp.float32)

    def conv3x3(inp, w, b):
        y = jax.lax.conv_general_dilated(
            inp, w, window_strides=(1, 1), padding="SAME",
            dimension_numbers=("NHWC", "HWIO", "NHWC"))
        return y + b.reshape(1, 1, 1, -1)

    def bn_relu(y, g, be):
        mean = jnp.mean(y, axis=(0, 1, 2), keepdims=True)
        var = jnp.mean((y - mean) ** 2, axis=(0, 1, 2), keepdims=True)
        y = g.reshape(1, 1, 1, -1) * (y - mean) / jnp.sqrt(var + EPS) \
            + be.reshape(1, 1, 1, -1)
        return jnp.maximum(y, 0.0)

    shortcut = jnp.einsum("nhwc,cd->nhwd", x, params["w1x1"]) \
        + params["b1x1"].reshape(1, 1, 1, -1)
    y = bn_relu(conv3x3(x, params["w1"], params["b1"]), params["g1"], params["be1"])
    y = bn_relu(conv3x3(y, params["w2"], params["b2"]), params["g2"], params["be2"])
    return jnp.transpose(shortcut + y, (0, 3, 1, 2))


def init_params(key, in_ch, out_ch):
    k1, k2, k3 = jax.random.split(key, 3)
    return dict(
        # conv_block weights (HWIO) and biases
        w1=0.1 * jax.random.normal(k1, (3, 3, in_ch, out_ch), jnp.float32),
        b1=jnp.linspace(-0.1, 0.1, out_ch, dtype=jnp.float32),
        g1=jnp.ones((out_ch,), jnp.float32),    # BN gamma (PyTorch default)
        be1=jnp.zeros((out_ch,), jnp.float32),  # BN beta  (PyTorch default)
        w2=0.1 * jax.random.normal(k2, (3, 3, out_ch, out_ch), jnp.float32),
        b2=jnp.linspace(0.1, -0.1, out_ch, dtype=jnp.float32),
        g2=jnp.ones((out_ch,), jnp.float32),
        be2=jnp.zeros((out_ch,), jnp.float32),
        # 1x1 shortcut conv
        w1x1=0.1 * jax.random.normal(k3, (in_ch, out_ch), jnp.float32),
        b1x1=jnp.linspace(-0.05, 0.05, out_ch, dtype=jnp.float32),
    )


if __name__ == "__main__":
    in_ch, out_ch = 4, 8
    N, H, W = 2, 16, 16

    key = jax.random.PRNGKey(0)
    kx, kp = jax.random.split(key)
    x = jax.random.normal(kx, (N, in_ch, H, W), jnp.float32)
    params = init_params(kp, in_ch, out_ch)

    out = jax.block_until_ready(residual_block_pallas(x, params))

    assert out.shape == (N, out_ch, H, W), out.shape
    ref = residual_block_ref(x, params)
    max_err = float(jnp.max(jnp.abs(out - ref)))
    # all-f32 GEMM + f32 accumulation: tight tolerance
    assert max_err < 1e-3, f"max abs error {max_err}"

    print("KERNEL_OK")
</pallas_src>

<mosaic_0001>
module attributes {stable_mosaic.version = 11 : i64} {
  func.func @_conv1_bn_relu_shortcut_kernel(%arg0: memref<36x512xf32, #tpu.memory_space<vmem>>, %arg1: memref<16x36xf32, #tpu.memory_space<vmem>>, %arg2: memref<16x1xf32, #tpu.memory_space<vmem>>, %arg3: memref<8x1xf32, #tpu.memory_space<vmem>>, %arg4: memref<8x1xf32, #tpu.memory_space<vmem>>, %arg5: memref<8x512xf32, #tpu.memory_space<vmem>>, %arg6: memref<8x512xf32, #tpu.memory_space<vmem>>) attributes {dimension_semantics = [], scalar_prefetch = 0 : i64, scratch_operands = 0 : i64, tpu.core_type = #tpu.core_type<tc>} {
    %c0 = arith.constant 0 : index
    %c0_0 = arith.constant 0 : index
    %0 = vector.load %arg1[%c0, %c0_0] : memref<16x36xf32, #tpu.memory_space<vmem>>, vector<16x36xf32>
    %c0_1 = arith.constant 0 : index
    %c0_2 = arith.constant 0 : index
    %1 = vector.load %arg0[%c0_1, %c0_2] : memref<36x512xf32, #tpu.memory_space<vmem>>, vector<36x512xf32>
    %cst = arith.constant dense<0.000000e+00> : vector<16x512xf32>
    %2 = tpu.matmul %0, %1, %cst {dimension_numbers = #tpu.dot_dimension_numbers<[1], [0], [0], [1], [0, 0, 1, 1], [], []>} : vector<16x36xf32>, vector<36x512xf32>, vector<16x512xf32> -> vector<16x512xf32>
    %c0_3 = arith.constant 0 : index
    %c0_4 = arith.constant 0 : index
    %3 = vector.load %arg2[%c0_3, %c0_4] : memref<16x1xf32, #tpu.memory_space<vmem>>, vector<16x1xf32>
    %4 = vector.broadcast %3 : vector<16x1xf32> to vector<16x512xf32>
    %5 = arith.addf %2, %4 : vector<16x512xf32>
    %6 = vector.extract_strided_slice %5 {offsets = [0, 0], sizes = [8, 512], strides = [1, 1]} : vector<16x512xf32> to vector<8x512xf32>
    %7 = vector.extract_strided_slice %5 {offsets = [8, 0], sizes = [8, 512], strides = [1, 1]} : vector<16x512xf32> to vector<8x512xf32>
    %c0_5 = arith.constant 0 : index
    %c0_6 = arith.constant 0 : index
    %8 = vector.load %arg6[%c0_5, %c0_6] : memref<8x512xf32, #tpu.memory_space<vmem>>, vector<8x512xf32>
    tpu.vector_store %arg6[%c0_5, %c0_6], %7 {strides = array<i32>} : memref<8x512xf32, #tpu.memory_space<vmem>>, vector<8x512xf32>,
    %cst_7 = arith.constant dense<0.000000e+00> : vector<8xf32>
    %9 = vector.multi_reduction <add>, %6, %cst_7 [1] : vector<8x512xf32> to vector<8xf32>
    %10 = vector.shape_cast %9 : vector<8xf32> to vector<8x1xf32>
    %cst_8 = arith.constant 0.001953125 : f32
    %11 = vector.broadcast %cst_8 : f32 to vector<8x1xf32>
    %12 = arith.mulf %10, %11 : vector<8x1xf32>
    %13 = arith.mulf %6, %6 : vector<8x512xf32>
    %cst_9 = arith.constant dense<0.000000e+00> : vector<8xf32>
    %14 = vector.multi_reduction <add>, %13, %cst_9 [1] : vector<8x512xf32> to vector<8xf32>
    %15 = vector.shape_cast %14 : vector<8xf32> to vector<8x1xf32>
    %cst_10 = arith.constant 0.001953125 : f32
    %16 = vector.broadcast %cst_10 : f32 to vector<8x1xf32>
    %17 = arith.mulf %15, %16 : vector<8x1xf32>
    %18 = arith.mulf %12, %12 : vector<8x1xf32>
    %19 = arith.subf %17, %18 : vector<8x1xf32>
    %c0_11 = arith.constant 0 : index
    %c0_12 = arith.constant 0 : index
    %20 = vector.load %arg3[%c0_11, %c0_12] : memref<8x1xf32, #tpu.memory_space<vmem>>, vector<8x1xf32>
    %cst_13 = arith.constant 9.99999974E-6 : f32
    %21 = vector.broadcast %cst_13 : f32 to vector<8x1xf32>
    %22 = arith.addf %19, %21 : vector<8x1xf32>
    %23 = math.rsqrt %22 : vector<8x1xf32>
    %24 = arith.mulf %20, %23 : vector<8x1xf32>
    %c0_14 = arith.constant 0 : index
    %c0_15 = arith.constant 0 : index
    %25 = vector.load %arg4[%c0_14, %c0_15] : memref<8x1xf32, #tpu.memory_space<vmem>>, vector<8x1xf32>
    %26 = arith.mulf %12, %24 : vector<8x1xf32>
    %27 = arith.subf %25, %26 : vector<8x1xf32>
    %28 = vector.broadcast %24 : vector<8x1xf32> to vector<8x512xf32>
    %29 = arith.mulf %6, %28 : vector<8x512xf32>
    %30 = vector.broadcast %27 : vector<8x1xf32> to vector<8x512xf32>
    %31 = arith.addf %29, %30 : vector<8x512xf32>
    %cst_16 = arith.constant 0.000000e+00 : f32
    %32 = vector.broadcast %cst_16 : f32 to vector<8x512xf32>
    %33 = arith.maximumf %31, %32 : vector<8x512xf32>
    %c0_17 = arith.constant 0 : index
    %c0_18 = arith.constant 0 : index
    %34 = vector.load %arg5[%c0_17, %c0_18] : memref<8x512xf32, #tpu.memory_space<vmem>>, vector<8x512xf32>
    tpu.vector_store %arg5[%c0_17, %c0_18], %33 {strides = array<i32>} : memref<8x512xf32, #tpu.memory_space<vmem>>, vector<8x512xf32>,
    return
  }
}

module attributes {stable_mosaic.version = 11 : i64} {
  func.func @_conv2_bn_relu_add_kernel(%arg0: memref<72x512xf32, #tpu.memory_space<vmem>>, %arg1: memref<8x72xf32, #tpu.memory_space<vmem>>, %arg2: memref<8x1xf32, #tpu.memory_space<vmem>>, %arg3: memref<8x1xf32, #tpu.memory_space<vmem>>, %arg4: memref<8x1xf32, #tpu.memory_space<vmem>>, %arg5: memref<8x512xf32, #tpu.memory_space<vmem>>, %arg6: memref<8x512xf32, #tpu.memory_space<vmem>>) attributes {dimension_semantics = [], scalar_prefetch = 0 : i64, scratch_operands = 0 : i64, tpu.core_type = #tpu.core_type<tc>} {
    %c0 = arith.constant 0 : index
    %c0_0 = arith.constant 0 : index
    %0 = vector.load %arg1[%c0, %c0_0] : memref<8x72xf32, #tpu.memory_space<vmem>>, vector<8x72xf32>
    %c0_1 = arith.constant 0 : index
    %c0_2 = arith.constant 0 : index
    %1 = vector.load %arg0[%c0_1, %c0_2] : memref<72x512xf32, #tpu.memory_space<vmem>>, vector<72x512xf32>
    %cst = arith.constant dense<0.000000e+00> : vector<8x512xf32>
    %2 = tpu.matmul %0, %1, %cst {dimension_numbers = #tpu.dot_dimension_numbers<[1], [0], [0], [1], [0, 0, 1, 1], [], []>} : vector<8x72xf32>, vector<72x512xf32>, vector<8x512xf32> -> vector<8x512xf32>
    %c0_3 = arith.constant 0 : index
    %c0_4 = arith.constant 0 : index
    %3 = vector.load %arg2[%c0_3, %c0_4] : memref<8x1xf32, #tpu.memory_space<vmem>>, vector<8x1xf32>
    %4 = vector.broadcast %3 : vector<8x1xf32> to vector<8x512xf32>
    %5 = arith.addf %2, %4 : vector<8x512xf32>
    %cst_5 = arith.constant dense<0.000000e+00> : vector<8xf32>
    %6 = vector.multi_reduction <add>, %5, %cst_5 [1] : vector<8x512xf32> to vector<8xf32>
    %7 = vector.shape_cast %6 : vector<8xf32> to vector<8x1xf32>
    %cst_6 = arith.constant 0.001953125 : f32
    %8 = vector.broadcast %cst_6 : f32 to vector<8x1xf32>
    %9 = arith.mulf %7, %8 : vector<8x1xf32>
    %10 = arith.mulf %5, %5 : vector<8x512xf32>
    %cst_7 = arith.constant dense<0.000000e+00> : vector<8xf32>
    %11 = vector.multi_reduction <add>, %10, %cst_7 [1] : vector<8x512xf32> to vector<8xf32>
    %12 = vector.shape_cast %11 : vector<8xf32> to vector<8x1xf32>
    %cst_8 = arith.constant 0.001953125 : f32
    %13 = vector.broadcast %cst_8 : f32 to vector<8x1xf32>
    %14 = arith.mulf %12, %13 : vector<8x1xf32>
    %15 = arith.mulf %9, %9 : vector<8x1xf32>
    %16 = arith.subf %14, %15 : vector<8x1xf32>
    %c0_9 = arith.constant 0 : index
    %c0_10 = arith.constant 0 : index
    %17 = vector.load %arg3[%c0_9, %c0_10] : memref<8x1xf32, #tpu.memory_space<vmem>>, vector<8x1xf32>
    %cst_11 = arith.constant 9.99999974E-6 : f32
    %18 = vector.broadcast %cst_11 : f32 to vector<8x1xf32>
    %19 = arith.addf %16, %18 : vector<8x1xf32>
    %20 = math.rsqrt %19 : vector<8x1xf32>
    %21 = arith.mulf %17, %20 : vector<8x1xf32>
    %c0_12 = arith.constant 0 : index
    %c0_13 = arith.constant 0 : index
    %22 = vector.load %arg4[%c0_12, %c0_13] : memref<8x1xf32, #tpu.memory_space<vmem>>, vector<8x1xf32>
    %23 = arith.mulf %9, %21 : vector<8x1xf32>
    %24 = arith.subf %22, %23 : vector<8x1xf32>
    %25 = vector.broadcast %21 : vector<8x1xf32> to vector<8x512xf32>
    %26 = arith.mulf %5, %25 : vector<8x512xf32>
    %27 = vector.broadcast %24 : vector<8x1xf32> to vector<8x512xf32>
    %28 = arith.addf %26, %27 : vector<8x512xf32>
    %cst_14 = arith.constant 0.000000e+00 : f32
    %29 = vector.broadcast %cst_14 : f32 to vector<8x512xf32>
    %30 = arith.maximumf %28, %29 : vector<8x512xf32>
    %c0_15 = arith.constant 0 : index
    %c0_16 = arith.constant 0 : index
    %31 = vector.load %arg5[%c0_15, %c0_16] : memref<8x512xf32, #tpu.memory_space<vmem>>, vector<8x512xf32>
    %32 = arith.addf %30, %31 : vector<8x512xf32>
    %c0_17 = arith.constant 0 : index
    %c0_18 = arith.constant 0 : index
    %33 = vector.load %arg6[%c0_17, %c0_18] : memref<8x512xf32, #tpu.memory_space<vmem>>, vector<8x512xf32>
    tpu.vector_store %arg6[%c0_17, %c0_18], %32 {strides = array<i32>} : memref<8x512xf32, #tpu.memory_space<vmem>>, vector<8x512xf32>,
    return
  }
}

</mosaic_0001>

<bundles_post_ra>
// kernel: residual_block_pallas.2
= control target key start
LH: loop header
LB: loop body
LE: loop exit
PB: predicated region body
PF: predicated region fallthrough
CT: control target
= control target key end

     0   :  { %v323_v3 = vmov 0.0   ;;  %v324_v8 = vmov 0   ;;  %vm63_vm0 = vcmask 1043456   ;;  %vm56_vm1 = vcmask 293888   ;;  %s462_s0 = inlined_call_operand.vmem [shape: f32[36,512], index: 0, kind: input, shape index: {}]   ;;  %s463_s2 = inlined_call_operand.vmem [shape: f32[16,1], index: 2, kind: input, shape index: {}]   ;;  %s464_s1 = inlined_call_operand.vmem [shape: f32[16,36], index: 1, kind: input, shape index: {}]   ;;  %s465_s3 = inlined_call_operand.vmem [shape: f32[8,1], index: 3, kind: input, shape index: {}]   ;;  %s466_s4 = inlined_call_operand.vmem [shape: f32[8,1], index: 4, kind: input, shape index: {}]   ;;  %s467_s5 = inlined_call_operand.vmem [shape: f32[8,512], index: 5, kind: output, shape index: {0}]   ;;  %s468_s6 = inlined_call_operand.vmem [shape: f32[8,512], index: 6, kind: output, shape index: {1}]  }
   0x1   :  { %v25_v0 = vld [vmem:[%s462_s0 + $0x8] sm:$0xff]  ;;  %v27_v2 = vld [vmem:[%s462_s0 + $0x18] sm:$0xff]  ;;  %140 = vmatprep.mubr.f32.mxu0 %v323_v3  ;;  %217 = vmatprep.mubr.f32.mxu1 %v323_v3  ;;  %v24_v6 = vld [vmem:[%s462_s0] sm:$0xff] }
   0x2   :  { %v29_v1 = vld [vmem:[%s462_s0 + $0x28] sm:$0xff]  ;;  %v31_v5 = vld [vmem:[%s462_s0 + $0x38] sm:$0xff]  ;;  %v28_v7 = vld [vmem:[%s462_s0 + $0x20] sm:$0xff]  ;;  %319 = vset.pattern.permute.xlu0 %v324_v8  ;;  %320 = vset.pattern.permute.xlu1 %v324_v8 }
   0x3   :  { %v301_v4 = vpack.c.bf16 %v29_v1, %v25_v0  ;;  %v309_v9 = vpack.c.bf16 %v31_v5, %v27_v2  ;;  %v303_v10 = vpack.c.bf16 %v28_v7, %v24_v6  ;;  %v26_v11 = vld [vmem:[%s462_s0 + $0x10] sm:$0xff]  ;;  %v33_v13 = vld [vmem:[%s462_s0 + $0x48] sm:$0xff]  ;;  %v35_v16 = vld [vmem:[%s462_s0 + $0x58] sm:$0xff] }
   0x4   :  { %v30_v12 = vld [vmem:[%s462_s0 + $0x30] sm:$0xff]  ;;  %v37_v15 = vld [vmem:[%s462_s0 + $0x68] sm:$0xff]  ;;  %v39_v17 = vld [vmem:[%s462_s0 + $0x78] sm:$0xff] }
   0x5   :  { %302 = vmatprep.subr.bf16.mxu0 %v301_v4  ;;  %v311_v14 = vpack.c.bf16 %v30_v12, %v26_v11  ;;  %310 = vmatprep.subr.bf16.mxu1 %v309_v9  ;;  %v305_v18 = vpack.c.bf16 %v37_v15, %v33_v13  ;;  %v313_v19 = vpack.c.bf16 %v39_v17, %v35_v16  ;;  %v32_v20 = vld [vmem:[%s462_s0 + $0x40] sm:$0xff]  ;;  %v34_v22 = vld [vmem:[%s462_s0 + $0x50] sm:$0xff]  ;;  %v41_v26 = vld [vmem:[%s462_s0 + $0x88] sm:$0xf] }
   0x6   :  { %304 = vmatpush1.bf16.msra.mxu0 %v303_v10  ;;  %v36_v21 = vld [vmem:[%s462_s0 + $0x60] sm:$0xff]  ;;  %v38_v24 = vld [vmem:[%s462_s0 + $0x70] sm:$0xff]  ;;  %v43_v27 = vld [vmem:[%s462_s0 + $0x98] sm:$0xf] }
   0x7   :  { %312 = vmatpush1.bf16.msra.mxu1 %v311_v14  ;;  %v307_v23 = vpack.c.bf16 %v36_v21, %v32_v20  ;;  %306 = vmatprep.subr.bf16.mxu0 %v305_v18  ;;  %v315_v25 = vpack.c.bf16 %v38_v24, %v34_v22  ;;  %v44_v28 = vld [vmem:[%s463_s2] sm:$0xff]  ;;  %v42_v30 = vld [vmem:[%s462_s0 + $0x90] sm:$0xf]  ;;  %v23_v32 = vld [vmem:[%s464_s1 + $0x8] sm:$0xff] }
   0x8   :  { %314 = vmatprep.subr.bf16.mxu1 %v313_v19  ;;  %48 = vperm.xlu0 %319, %v44_v28   ;;  %v40_v29 = vld [vmem:[%s462_s0 + $0x80] sm:$0xf]  ;;  %v45_v1 = vld [vmem:[%s463_s2 + $0x8] sm:$0xff] }
   0x9   :  { %v22_v31 = vld [vmem:[%s464_s1] sm:$0xff] }
   0xa   :  { %308 = vmatpush1.bf16.msra.mxu0 %v307_v23  ;;  %v252_v59 = vld [vmem:[%s465_s3] sm:$0xff] }
   0xb   :  { %316 = vmatpush1.bf16.msra.mxu1 %v315_v25  ;;  %293 = vmatprep.subr.msk.mxu0 %vm63_vm0, %v41_v26  ;;  %v256_v62 = vld [vmem:[%s466_s4] sm:$0xff] }
   0xc   :  { %297 = vmatprep.subr.msk.mxu1 %vm63_vm0, %v43_v27 }
   0xe   :  { %294 = vmatpush1.msk.msra.mxu0 %vm63_vm0, %v40_v29 }
   0xf   :  { %298 = vmatpush1.msk.msra.mxu1 %vm63_vm0, %v42_v30  ;;  %295 = vmatmul.mubr.msk.f32.vlgmr.msra.gmra.mrb[0].mxu0 %vm56_vm1, %v22_v31 }
  0x10   :  { %299 = vmatmul.mubr.msk.f32.vlgmr.msra.gmra.mrb[0].mxu1 %vm56_vm1, %v22_v31  ;;  %146 = vmatprep.mubr.f32.mxu0 %v323_v3 }
  0x11   :  { %223 = vmatprep.mubr.f32.mxu1 %v323_v3 }
  0x13   :  { %296 = vmatmul.mubr.msk.f32.gmra.mrb[2].mxu0 %vm56_vm1, %v23_v32 }
  0x14   :  { %300 = vmatmul.mubr.msk.f32.gmra.mrb[2].mxu1 %vm56_vm1, %v23_v32 }
  0x87   :  { %v49_v33 = vpop.permute.xlu0 %48 }
  0xe2   :  { %v142_v34 = vpop.f32.mrb[0].mxu0 }
  0xe3   :  { %v143_v35 = vadd.f32 %v142_v34, %v49_v33  ;;  %v219_v36 = vpop.f32.mrb[0].mxu1  ;;  %v144_v37 = vpop.f32.mrb[1].mxu0 }
  0xe4   :  { %v220_v38 = vadd.f32 %v219_v36, %v49_v33  ;;  %v145_v39 = vadd.f32 %v144_v37, %v49_v33  ;;  %v221_v40 = vpop.f32.mrb[1].mxu1 }
  0xe5   :  { %v240_v41 = vmul.f32 %v143_v35, %v143_v35  ;;  %v222_v44 = vadd.f32 %v221_v40, %v49_v33 }
  0xe6   :  { %v234_v42 = vadd.f32 %v145_v39, %v143_v35  ;;  %v241_v43 = vmul.f32 %v145_v39, %v145_v39  ;;  %v242_v46 = vmul.f32 %v220_v38, %v220_v38  ;;  %v148_v2 = vpop.f32.mrb[2].mxu0 }
  0xe7   :  { %v243_v49 = vmul.f32 %v222_v44, %v222_v44  ;;  %v225_v3 = vpop.f32.mrb[2].mxu1  ;;  %v150_v4 = vpop.f32.mrb[3].mxu0 }
  0xe8   :  { %v235_v45 = vadd.f32 %v234_v42, %v220_v38  ;;  %v244_v47 = vadd.f32 %v241_v43, %v240_v41  ;;  %v227_v5 = vpop.f32.mrb[3].mxu1 }
  0xea   :  { %v236_v48 = vadd.f32 %v235_v45, %v222_v44  ;;  %v245_v50 = vadd.f32 %v244_v47, %v242_v46 }
  0xec   :  { %237 = vadd.xlane.f32.xlu0 %v236_v48  ;;  %v246_v51 = vadd.f32 %v245_v50, %v243_v49 }
  0xee   :  { %247 = vadd.xlane.f32.xlu1 %v246_v51 }
 0x179   :  { %v238_v52 = vpop.xlane.xlu0 %237 }
 0x17a   :  { %v239_v53 = vmul.f32 0.001953125, %v238_v52 }
 0x17b   :  { %v248_v54 = vpop.xlane.xlu1 %247 }
 0x17c   :  { %v250_v55 = vmul.f32 %v239_v53, %v239_v53  ;;  %v249_v56 = vmul.f32 0.001953125, %v248_v54 }
 0x17e   :  { %v251_v57 = vsub.f32 %v249_v56, %v250_v55 }
 0x180   :  { %v253_v58 = vadd.f32 1e-05, %v251_v57 }
 0x182   :  { %321 = vrsqrt.f32 %v253_v58 }
 0x18c   :  { %v322_v60 = vpop.eup %321 }
 0x18d   :  { %v255_v61 = vmul.f32 %v322_v60, %v252_v59 }
 0x18f   :  { %261 = vperm.xlu1 %320, %v255_v61   ;;  %v257_v63 = vmul.f32 %v255_v61, %v239_v53 }
 0x191   :  { %v258_v0 = vsub.f32 %v256_v62, %v257_v63 }
 0x193   :  { %270 = vperm.xlu1 %320, %v258_v0  }
 0x197   :  { %53 = vperm.xlu1 %320, %v45_v1  }
 0x20e   :  { %v262_v6 = vpop.permute.xlu1 %261 }
 0x20f   :  { %v264_v7 = vmul.f32 %v262_v6, %v143_v35  ;;  %v265_v8 = vmul.f32 %v262_v6, %v145_v39  ;;  %v266_v9 = vmul.f32 %v262_v6, %v220_v38  ;;  %v267_v10 = vmul.f32 %v262_v6, %v222_v44 }
 0x212   :  { %v271_v11 = vpop.permute.xlu1 %270 }
 0x213   :  { %v273_v12 = vadd.f32 %v271_v11, %v264_v7  ;;  %v274_v13 = vadd.f32 %v271_v11, %v265_v8  ;;  %v275_v14 = vadd.f32 %v271_v11, %v266_v9  ;;  %v276_v15 = vadd.f32 %v271_v11, %v267_v10 }
 0x215   :  { %v277_v16 = vmax.f32 %v273_v12, 0.0  ;;  %v278_v17 = vmax.f32 %v274_v13, 0.0  ;;  %v279_v18 = vmax.f32 %v275_v14, 0.0  ;;  %v280_v19 = vmax.f32 %v276_v15, 0.0 }
 0x216   :  { %v54_v20 = vpop.permute.xlu1 %53 }
 0x217   :  { %281 = vst [vmem:[%s467_s5] sm:$0xff] %v277_v16  ;;  %282 = vst [vmem:[%s467_s5 + $0x8] sm:$0xff] %v278_v17  ;;  %v149_v21 = vadd.f32 %v148_v2, %v54_v20  ;;  %v151_v22 = vadd.f32 %v150_v4, %v54_v20  ;;  %v226_v23 = vadd.f32 %v225_v3, %v54_v20 }
 0x218   :  { %283 = vst [vmem:[%s467_s5 + $0x10] sm:$0xff] %v279_v18  ;;  %284 = vst [vmem:[%s467_s5 + $0x18] sm:$0xff] %v280_v19  ;;  %v228_v24 = vadd.f32 %v227_v5, %v54_v20 }
 0x219   :  { %230 = vst [vmem:[%s468_s6] sm:$0xff] %v149_v21  ;;  %231 = vst [vmem:[%s468_s6 + $0x8] sm:$0xff] %v151_v22 }
 0x21a   :  { %232 = vst [vmem:[%s468_s6 + $0x10] sm:$0xff] %v226_v23  ;;  %233 = vst [vmem:[%s468_s6 + $0x18] sm:$0xff] %v228_v24 }

// kernel: residual_block_pallas.3
= control target key start
LH: loop header
LB: loop body
LE: loop exit
PB: predicated region body
PF: predicated region fallthrough
CT: control target
= control target key end

     0   :  { %v315_v3 = vmov 0.0   ;;  %v316_v8 = vmov 0   ;;  %vm66_vm0 = vcmask 588800   ;;  %s496_s0 = inlined_call_operand.vmem [shape: f32[72,512], index: 0, kind: input, shape index: {}]   ;;  %s497_s2 = inlined_call_operand.vmem [shape: f32[8,1], index: 2, kind: input, shape index: {}]   ;;  %s498_s1 = inlined_call_operand.vmem [shape: f32[8,72], index: 1, kind: input, shape index: {}]   ;;  %s499_s3 = inlined_call_operand.vmem [shape: f32[8,1], index: 3, kind: input, shape index: {}]   ;;  %s500_s4 = inlined_call_operand.vmem [shape: f32[8,1], index: 4, kind: input, shape index: {}]   ;;  %s501_s5 = inlined_call_operand.vmem [shape: f32[8,512], index: 5, kind: input, shape index: {}]   ;;  %s502_s6 = inlined_call_operand.vmem [shape: f32[8,512], index: 6, kind: output, shape index: {}]  }
   0x1   :  { %v25_v0 = vld [vmem:[%s496_s0 + $0x8] sm:$0xff]  ;;  %v27_v2 = vld [vmem:[%s496_s0 + $0x18] sm:$0xff]  ;;  %134 = vmatprep.mubr.f32.mxu0 %v315_v3  ;;  %205 = vmatprep.mubr.f32.mxu1 %v315_v3  ;;  %v24_v6 = vld [vmem:[%s496_s0] sm:$0xff] }
   0x2   :  { %v29_v1 = vld [vmem:[%s496_s0 + $0x28] sm:$0xff]  ;;  %v31_v5 = vld [vmem:[%s496_s0 + $0x38] sm:$0xff]  ;;  %v28_v7 = vld [vmem:[%s496_s0 + $0x20] sm:$0xff]  ;;  %311 = vset.pattern.permute.xlu0 %v316_v8  ;;  %312 = vset.pattern.permute.xlu1 %v316_v8 }
   0x3   :  { %v277_v4 = vpack.c.bf16 %v29_v1, %v25_v0  ;;  %v293_v9 = vpack.c.bf16 %v31_v5, %v27_v2  ;;  %v279_v10 = vpack.c.bf16 %v28_v7, %v24_v6  ;;  %v26_v11 = vld [vmem:[%s496_s0 + $0x10] sm:$0xff]  ;;  %v33_v13 = vld [vmem:[%s496_s0 + $0x48] sm:$0xff]  ;;  %v35_v16 = vld [vmem:[%s496_s0 + $0x58] sm:$0xff] }
   0x4   :  { %v30_v12 = vld [vmem:[%s496_s0 + $0x30] sm:$0xff]  ;;  %v37_v15 = vld [vmem:[%s496_s0 + $0x68] sm:$0xff]  ;;  %v39_v17 = vld [vmem:[%s496_s0 + $0x78] sm:$0xff] }
   0x5   :  { %278 = vmatprep.subr.bf16.mxu0 %v277_v4  ;;  %v295_v14 = vpack.c.bf16 %v30_v12, %v26_v11  ;;  %294 = vmatprep.subr.bf16.mxu1 %v293_v9  ;;  %v281_v18 = vpack.c.bf16 %v37_v15, %v33_v13  ;;  %v297_v19 = vpack.c.bf16 %v39_v17, %v35_v16  ;;  %v32_v20 = vld [vmem:[%s496_s0 + $0x40] sm:$0xff]  ;;  %v34_v22 = vld [vmem:[%s496_s0 + $0x50] sm:$0xff]  ;;  %v41_v25 = vld [vmem:[%s496_s0 + $0x88] sm:$0xff] }
   0x6   :  { %280 = vmatpush1.bf16.msra.mxu0 %v279_v10  ;;  %v36_v21 = vld [vmem:[%s496_s0 + $0x60] sm:$0xff]  ;;  %v38_v24 = vld [vmem:[%s496_s0 + $0x70] sm:$0xff]  ;;  %v45_v26 = vld [vmem:[%s496_s0 + $0xa8] sm:$0xff] }
   0x7   :  { %296 = vmatpush1.bf16.msra.mxu1 %v295_v14  ;;  %v283_v23 = vpack.c.bf16 %v36_v21, %v32_v20  ;;  %282 = vmatprep.subr.bf16.mxu0 %v281_v18  ;;  %v299_v27 = vpack.c.bf16 %v38_v24, %v34_v22  ;;  %v285_v28 = vpack.c.bf16 %v45_v26, %v41_v25  ;;  %v43_v29 = vld [vmem:[%s496_s0 + $0x98] sm:$0xff]  ;;  %v40_v31 = vld [vmem:[%s496_s0 + $0x80] sm:$0xff]  ;;  %v42_v34 = vld [vmem:[%s496_s0 + $0x90] sm:$0xff] }
   0x8   :  { %298 = vmatprep.subr.bf16.mxu1 %v297_v19  ;;  %v47_v30 = vld [vmem:[%s496_s0 + $0xb8] sm:$0xff]  ;;  %v44_v33 = vld [vmem:[%s496_s0 + $0xa0] sm:$0xff]  ;;  %v46_v35 = vld [vmem:[%s496_s0 + $0xb0] sm:$0xff] }
   0x9   :  { %v301_v32 = vpack.c.bf16 %v47_v30, %v43_v29  ;;  %v287_v36 = vpack.c.bf16 %v44_v33, %v40_v31  ;;  %v49_v37 = vld [vmem:[%s496_s0 + $0xc8] sm:$0xff]  ;;  %v51_v39 = vld [vmem:[%s496_s0 + $0xd8] sm:$0xff]  ;;  %v303_v40 = vpack.c.bf16 %v46_v35, %v42_v34  ;;  %v48_v43 = vld [vmem:[%s496_s0 + $0xc0] sm:$0xff] }
   0xa   :  { %284 = vmatpush1.bf16.msra.mxu0 %v283_v23  ;;  %v53_v38 = vld [vmem:[%s496_s0 + $0xe8] sm:$0xff]  ;;  %v55_v42 = vld [vmem:[%s496_s0 + $0xf8] sm:$0xff]  ;;  %v52_v44 = vld [vmem:[%s496_s0 + $0xe0] sm:$0xff] }
   0xb   :  { %300 = vmatpush1.bf16.msra.mxu1 %v299_v27  ;;  %286 = vmatprep.subr.bf16.mxu0 %v285_v28  ;;  %v289_v41 = vpack.c.bf16 %v53_v38, %v49_v37  ;;  %v305_v45 = vpack.c.bf16 %v55_v42, %v51_v39  ;;  %v50_v46 = vld [vmem:[%s496_s0 + $0xd0] sm:$0xff]  ;;  %v291_v48 = vpack.c.bf16 %v52_v44, %v48_v43  ;;  %v60_v49 = vld [vmem:[%s497_s2] sm:$0xff]  ;;  %v57_v51 = vld [vmem:[%s496_s0 + $0x108] sm:$0xff] }
   0xc   :  { %302 = vmatprep.subr.bf16.mxu1 %v301_v32  ;;  %v54_v47 = vld [vmem:[%s496_s0 + $0xf0] sm:$0xff]  ;;  %63 = vperm.xlu0 %311, %v60_v49   ;;  %v59_v52 = vld [vmem:[%s496_s0 + $0x118] sm:$0xff]  ;;  %v56_v53 = vld [vmem:[%s496_s0 + $0x100] sm:$0xff] }
   0xd   :  { %v307_v50 = vpack.c.bf16 %v54_v47, %v50_v46  ;;  %v58_v54 = vld [vmem:[%s496_s0 + $0x110] sm:$0xff]  ;;  %v23_v55 = vld [vmem:[%s498_s1] sm:$0xff]  ;;  %v260_v35 = vld [vmem:[%s501_s5 + $0x8] sm:$0xff] }
   0xe   :  { %288 = vmatpush1.bf16.msra.mxu0 %v287_v36  ;;  %v230_v18 = vld [vmem:[%s499_s3] sm:$0xff]  ;;  %v261_v36 = vld [vmem:[%s501_s5 + $0x10] sm:$0xff]  ;;  %v262_v37 = vld [vmem:[%s501_s5 + $0x18] sm:$0xff] }
   0xf   :  { %304 = vmatpush1.bf16.msra.mxu1 %v303_v40  ;;  %290 = vmatprep.subr.bf16.mxu0 %v289_v41  ;;  %v234_v21 = vld [vmem:[%s500_s4] sm:$0xff] }
  0x10   :  { %306 = vmatprep.subr.bf16.mxu1 %v305_v45  ;;  %v259_v30 = vld [vmem:[%s501_s5] sm:$0xff] }
  0x12   :  { %292 = vmatpush1.bf16.msra.mxu0 %v291_v48 }
  0x13   :  { %308 = vmatpush1.bf16.msra.mxu1 %v307_v50  ;;  %86 = vmatprep.subr.mxu0 %v57_v51 }
  0x14   :  { %157 = vmatprep.subr.mxu1 %v59_v52 }
  0x16   :  { %87 = vmatpush1.msra.mxu0 %v56_v53 }
  0x17   :  { %158 = vmatpush1.msra.mxu1 %v58_v54  ;;  %275 = vmatmul.mubr.msk.f32.vlgmr.msra.gmra.mrb[0].mxu0 %vm66_vm0, %v23_v55 }
  0x18   :  { %276 = vmatmul.mubr.msk.f32.vlgmr.msra.gmra.mrb[0].mxu1 %vm66_vm0, %v23_v55 }
  0x8b   :  { %v64_v56 = vpop.permute.xlu0 %63 }
  0xea   :  { %v136_v57 = vpop.f32.mrb[0].mxu0 }
  0xeb   :  { %v137_v58 = vadd.f32 %v136_v57, %v64_v56  ;;  %v207_v59 = vpop.f32.mrb[0].mxu1  ;;  %v138_v60 = vpop.f32.mrb[1].mxu0 }
  0xec   :  { %v208_v61 = vadd.f32 %v207_v59, %v64_v56  ;;  %v139_v62 = vadd.f32 %v138_v60, %v64_v56  ;;  %v209_v63 = vpop.f32.mrb[1].mxu1 }
  0xed   :  { %v218_v0 = vmul.f32 %v137_v58, %v137_v58  ;;  %v210_v3 = vadd.f32 %v209_v63, %v64_v56 }
  0xee   :  { %v212_v1 = vadd.f32 %v139_v62, %v137_v58  ;;  %v219_v2 = vmul.f32 %v139_v62, %v139_v62  ;;  %v220_v5 = vmul.f32 %v208_v61, %v208_v61 }
  0xef   :  { %v221_v8 = vmul.f32 %v210_v3, %v210_v3 }
  0xf0   :  { %v213_v4 = vadd.f32 %v212_v1, %v208_v61  ;;  %v222_v6 = vadd.f32 %v219_v2, %v218_v0 }
  0xf2   :  { %v214_v7 = vadd.f32 %v213_v4, %v210_v3  ;;  %v223_v9 = vadd.f32 %v222_v6, %v220_v5 }
  0xf4   :  { %215 = vadd.xlane.f32.xlu0 %v214_v7  ;;  %v224_v10 = vadd.f32 %v223_v9, %v221_v8 }
  0xf6   :  { %225 = vadd.xlane.f32.xlu1 %v224_v10 }
 0x181   :  { %v216_v11 = vpop.xlane.xlu0 %215 }
 0x182   :  { %v217_v12 = vmul.f32 0.001953125, %v216_v11 }
 0x183   :  { %v226_v13 = vpop.xlane.xlu1 %225 }
 0x184   :  { %v228_v14 = vmul.f32 %v217_v12, %v217_v12  ;;  %v227_v15 = vmul.f32 0.001953125, %v226_v13 }
 0x186   :  { %v229_v16 = vsub.f32 %v227_v15, %v228_v14 }
 0x188   :  { %v231_v17 = vadd.f32 1e-05, %v229_v16 }
 0x18a   :  { %313 = vrsqrt.f32 %v231_v17 }
 0x194   :  { %v314_v19 = vpop.eup %313 }
 0x195   :  { %v233_v20 = vmul.f32 %v314_v19, %v230_v18 }
 0x197   :  { %239 = vperm.xlu1 %312, %v233_v20   ;;  %v235_v22 = vmul.f32 %v233_v20, %v217_v12 }
 0x199   :  { %v236_v23 = vsub.f32 %v234_v21, %v235_v22 }
 0x19b   :  { %248 = vperm.xlu1 %312, %v236_v23  }
 0x216   :  { %v240_v24 = vpop.permute.xlu1 %239 }
 0x217   :  { %v242_v25 = vmul.f32 %v240_v24, %v137_v58  ;;  %v243_v26 = vmul.f32 %v240_v24, %v139_v62  ;;  %v244_v27 = vmul.f32 %v240_v24, %v208_v61  ;;  %v245_v28 = vmul.f32 %v240_v24, %v210_v3 }
 0x21a   :  { %v249_v29 = vpop.permute.xlu1 %248 }
 0x21b   :  { %v251_v31 = vadd.f32 %v249_v29, %v242_v25  ;;  %v252_v32 = vadd.f32 %v249_v29, %v243_v26  ;;  %v253_v33 = vadd.f32 %v249_v29, %v244_v27  ;;  %v254_v34 = vadd.f32 %v249_v29, %v245_v28 }
 0x21d   :  { %v255_v38 = vmax.f32 %v251_v31, 0.0  ;;  %v256_v39 = vmax.f32 %v252_v32, 0.0  ;;  %v257_v40 = vmax.f32 %v253_v33, 0.0  ;;  %v258_v41 = vmax.f32 %v254_v34, 0.0 }
 0x21f   :  { %v263_v42 = vadd.f32 %v259_v30, %v255_v38  ;;  %v264_v43 = vadd.f32 %v260_v35, %v256_v39  ;;  %v265_v44 = vadd.f32 %v261_v36, %v257_v40  ;;  %v266_v45 = vadd.f32 %v262_v37, %v258_v41 }
 0x221   :  { %267 = vst [vmem:[%s502_s6] sm:$0xff] %v263_v42  ;;  %268 = vst [vmem:[%s502_s6 + $0x8] sm:$0xff] %v264_v43 }
 0x222   :  { %269 = vst [vmem:[%s502_s6 + $0x10] sm:$0xff] %v265_v44  ;;  %270 = vst [vmem:[%s502_s6 + $0x18] sm:$0xff] %v266_v45 }

</bundles_post_ra>
